<compile_context>
chip_gen: v7x
topology: tpu7x:2x2x1
jax: 0.10.0
libtpu: 0.0.40
codegen_flags: <defaults>
</compile_context>

<pallas_src>
import jax
import jax.numpy as jnp
from jax import lax
from jax.experimental import pallas as pl
from jax.experimental.pallas import tpu as pltpu


def _make_resblock_kernel(H, W):
    HW = H * W

    def kernel(masks_ref, x_ref, we_ref, be_ref, wf_ref, bf_ref, wr_ref, br_ref,
               o_ref, stack_ref):
        # masks_ref: (8, HW) int32  border-validity for the 8 non-center taps
        # x_ref    : (Cfi, HW)      folded channels on sublanes, spatial on lanes
        # we_ref   : (Cfm, Cfi)     be_ref: (Cfm, 1)
        # wf_ref   : (Cfm, 9*Cfm)   im2col-fused (block-diag) 3x3 weights
        # bf_ref   : (Cfm, 1)       wr_ref: (Cfi, Cfm)     br_ref: (Cfi, 1)
        # stack_ref: VMEM scratch (9*Cfm, HW) f32
        cm = we_ref.shape[0]

        x = x_ref[...].astype(jnp.float32)                    # (Cfi, HW)
        be = be_ref[...]                                       # (Cfm, 1)

        # ---- expand_conv: 1x1 conv == (Cfm, Cfi) @ (Cfi, HW) on the MXU ----
        out_e = jnp.dot(we_ref[...], x,
                        preferred_element_type=jnp.float32) + be      # (Cfm, HW)

        # Pad constant for border positions (hoisted broadcast, reused 8x).
        be_full = jnp.broadcast_to(be, out_e.shape)

        # ---- fea_conv taps: each tap is a circular lane roll of out_e (XLU),
        #      with true-border positions replaced by the pad constant via the
        #      precomputed masks.  Each tap is written straight into scratch.
        t = 0
        mi = 0
        for oy in (-1, 0, 1):
            for ox in (-1, 0, 1):
                s = oy * W + ox
                if s == 0:
                    tap = out_e
                else:
                    rolled = pltpu.roll(out_e, shift=(-s) % HW, axis=1)
                    valid = masks_ref[mi:mi + 1, :] != 0       # (1, HW) bool
                    tap = jnp.where(valid, rolled, be_full)
                    mi += 1
                stack_ref[t * cm:(t + 1) * cm, :] = tap
                t += 1

        # ---- single fused im2col matmul for all 9 taps, + bias + identity ----
        acc = jnp.dot(wf_ref[...], stack_ref[...],
                      preferred_element_type=jnp.float32)      # (Cfm, HW)
        acc = acc + bf_ref[...] + out_e

        # ---- reduce_conv: 1x1 conv + outer residual ----
        out = jnp.dot(wr_ref[...], acc,
                      preferred_element_type=jnp.float32)      # (Cfi, HW)
        o_ref[...] = (out + br_ref[...] + x).astype(o_ref.dtype)

    return kernel


def _block_diag(w, g):
    """(O, I) -> (g*O, g*I): g copies of w on the diagonal, zeros elsewhere."""
    if g == 1:
        return w
    O, I = w.shape
    eye = jnp.eye(g, dtype=w.dtype)
    return (eye[:, None, :, None] * w[None, :, None, :]).reshape(g * O, g * I)


def _num_tensorcores():
    """Best-effort TensorCore count per chip (v7x: 2, earlier gens: 1)."""
    try:
        kind = jax.devices()[0].device_kind.lower()
    except Exception:
        return 1
    return 2 if "v7" in kind else 1


def _pick_fold(N, Cm, HW, num_cores):
    """Images folded per grid step: #steps ~= #TensorCores, sublanes packed."""
    steps = min(N, max(1, num_cores))
    g = max(1, N // steps)
    while N % g:
        g -= 1
    # Keep the folded 9-tap scratch small (v7x has 64 MiB VMEM per TC).
    max_g = max(1, (8 << 20) // (9 * Cm * HW * 4))
    g = min(g, max_g)
    while N % g:
        g -= 1
    return g


def resblock_pallas(x_nchw, params):
    """ResBlock forward. x: (N, C, H, W); params in PyTorch conv layout."""
    we, be, wf, bf, wr, br = params
    N, C, H, W = x_nchw.shape
    Cm = we.shape[0]
    HW = H * W

    G = _pick_fold(N, Cm, HW, _num_tensorcores())
    steps = N // G
    Cfi = G * C          # folded input/output channels per grid step
    Cfm = G * Cm         # folded mid channels per grid step

    # ---- kernel-friendly (block-diagonal, channels-first) parameter layouts ----
    we_fold = _block_diag(we.reshape(Cm, C).astype(jnp.float32), G)      # (Cfm, Cfi)
    be_fold = jnp.tile(be.reshape(Cm, 1).astype(jnp.float32), (G, 1))    # (Cfm, 1)
    # im2col 3x3 weights, tap-major column blocks; per-tap block-diagonal copies.
    wf_taps = jnp.transpose(wf.astype(jnp.float32), (2, 3, 0, 1)).reshape(9, Cm, Cm)
    wf_fold = jnp.concatenate([_block_diag(wf_taps[t], G) for t in range(9)],
                              axis=1)                                    # (Cfm, 9*Cfm)
    bf_fold = jnp.tile(bf.reshape(Cm, 1).astype(jnp.float32), (G, 1))    # (Cfm, 1)
    wr_fold = _block_diag(wr.reshape(C, Cm).astype(jnp.float32), G)      # (Cfi, Cfm)
    br_fold = jnp.tile(br.reshape(C, 1).astype(jnp.float32), (G, 1))     # (Cfi, 1)

    # ---- precomputed border-validity masks for the 8 non-center taps ----
    row = jnp.repeat(jnp.arange(H, dtype=jnp.int32), W)                  # (HW,)
    col = jnp.tile(jnp.arange(W, dtype=jnp.int32), H)                    # (HW,)
    mask_rows = []
    for oy in (-1, 0, 1):
        for ox in (-1, 0, 1):
            if oy == 0 and ox == 0:
                continue
            ok = ((row + oy >= 0) & (row + oy < H) &
                  (col + ox >= 0) & (col + ox < W))
            mask_rows.append(ok)
    masks = jnp.stack(mask_rows, axis=0).astype(jnp.int32)               # (8, HW)

    # Free row-major reshape: fold G consecutive images onto the sublane axis.
    x_fold = x_nchw.reshape(steps, Cfi, HW)

    def _const_spec(shape):
        nd = len(shape)
        return pl.BlockSpec(shape, lambda n, _nd=nd: (0,) * _nd)

    cost = pl.CostEstimate(
        flops=2 * N * HW * (Cm * C + Cm * 9 * Cm + C * Cm),
        transcendentals=0,
        bytes_accessed=4 * (2 * N * C * HW + we_fold.size + wf_fold.size
                            + wr_fold.size + be_fold.size + bf_fold.size
                            + br_fold.size + masks.size))

    out_fold = pl.pallas_call(
        _make_resblock_kernel(H, W),
        out_shape=jax.ShapeDtypeStruct((steps, Cfi, HW), x_nchw.dtype),
        grid_spec=pltpu.PrefetchScalarGridSpec(
            num_scalar_prefetch=0,
            grid=(steps,),
            in_specs=[
                _const_spec((8, HW)),                                 # border masks
                pl.BlockSpec((pl.Squeezed(), Cfi, HW), lambda n: (n, 0, 0)),
                _const_spec((Cfm, Cfi)),
                _const_spec((Cfm, 1)),
                _const_spec((Cfm, 9 * Cfm)),
                _const_spec((Cfm, 1)),
                _const_spec((Cfi, Cfm)),
                _const_spec((Cfi, 1)),
            ],
            out_specs=pl.BlockSpec((pl.Squeezed(), Cfi, HW), lambda n: (n, 0, 0)),
            scratch_shapes=[pltpu.VMEM((9 * Cfm, HW), jnp.float32)],
        ),
        compiler_params=pltpu.CompilerParams(
            dimension_semantics=("parallel",)),
        cost_estimate=cost,
    )(masks, x_fold, we_fold, be_fold, wf_fold, bf_fold, wr_fold, br_fold)

    return out_fold.reshape(N, C, H, W)


def resblock_ref(x_nchw, params):
    """Pure-JAX NCHW reference matching the PyTorch forward."""
    we, be, wf, bf, wr, br = params
    dn = ("NCHW", "OIHW", "NCHW")
    out = lax.conv_general_dilated(x_nchw, we, (1, 1), "VALID",
                                   dimension_numbers=dn) + be.reshape(1, -1, 1, 1)
    out_identity = out
    b0 = be.reshape(1, -1, 1)
    padded = jnp.pad(out, ((0, 0), (0, 0), (1, 1), (1, 1)))
    padded = padded.at[:, :, 0, :].set(b0)
    padded = padded.at[:, :, -1, :].set(b0)
    padded = padded.at[:, :, :, 0].set(b0)
    padded = padded.at[:, :, :, -1].set(b0)
    out = lax.conv_general_dilated(padded, wf, (1, 1), "VALID",
                                   dimension_numbers=dn)
    out = out + bf.reshape(1, -1, 1, 1) + out_identity
    out = lax.conv_general_dilated(out, wr, (1, 1), "VALID",
                                   dimension_numbers=dn) + br.reshape(1, -1, 1, 1)
    return out + x_nchw


if __name__ == "__main__":
    n_feats, ratio = 4, 2
    N, H, W = 2, 16, 16
    C, Cm = n_feats, int(ratio * n_feats)

    key = jax.random.PRNGKey(0)
    ks = jax.random.split(key, 7)
    x = jax.random.normal(ks[0], (N, C, H, W), jnp.float32)     # PyTorch NCHW input

    # Deterministic synthetic parameters in PyTorch conv layout (OIHW weights).
    we = jax.random.normal(ks[1], (Cm, C, 1, 1), jnp.float32) * 0.1   # expand_conv
    be = jax.random.normal(ks[2], (Cm,), jnp.float32) * 0.1
    wf = jax.random.normal(ks[3], (Cm, Cm, 3, 3), jnp.float32) * 0.1  # fea_conv
    bf = jax.random.normal(ks[4], (Cm,), jnp.float32) * 0.1
    wr = jax.random.normal(ks[5], (C, Cm, 1, 1), jnp.float32) * 0.1   # reduce_conv
    br = jax.random.normal(ks[6], (C,), jnp.float32) * 0.1
    params = (we, be, wf, bf, wr, br)

    out = resblock_pallas(x, params)
    jax.block_until_ready(out)

    ref = resblock_ref(x, params)
    max_err = float(jnp.max(jnp.abs(out - ref)))
    assert jnp.allclose(out, ref, atol=1e-4, rtol=1e-4), max_err

    print("KERNEL_OK")
</pallas_src>

<mosaic_0001>
module attributes {stable_mosaic.version = 11 : i64} {
  func.func @kernel(%arg0: i32, %arg1: memref<8x256xi32, #tpu.memory_space<vmem>>, %arg2: memref<1x8x256xf32, #tpu.memory_space<vmem>>, %arg3: memref<16x8xf32, #tpu.memory_space<vmem>>, %arg4: memref<16x1xf32, #tpu.memory_space<vmem>>, %arg5: memref<16x144xf32, #tpu.memory_space<vmem>>, %arg6: memref<16x1xf32, #tpu.memory_space<vmem>>, %arg7: memref<8x16xf32, #tpu.memory_space<vmem>>, %arg8: memref<8x1xf32, #tpu.memory_space<vmem>>, %arg9: memref<1x8x256xf32, #tpu.memory_space<vmem>>, %arg10: memref<144x256xf32, #tpu.memory_space<vmem>>) attributes {dimension_semantics = [#tpu.dimension_semantics<parallel>], iteration_bounds = array<i64: 1>, scalar_prefetch = 0 : i64, scratch_operands = 1 : i64, tpu.core_type = #tpu.core_type<tc>, window_params = [{pipeline_mode = #tpu.pipeline_mode<synchronous>, transform_indices = @transform_0, window_bounds = array<i64: 8, 256>}, {transform_indices = @transform_1, window_bounds = array<i64: 1, 8, 256>}, {pipeline_mode = #tpu.pipeline_mode<synchronous>, transform_indices = @transform_2, window_bounds = array<i64: 16, 8>}, {pipeline_mode = #tpu.pipeline_mode<synchronous>, transform_indices = @transform_3, window_bounds = array<i64: 16, 1>}, {pipeline_mode = #tpu.pipeline_mode<synchronous>, transform_indices = @transform_4, window_bounds = array<i64: 16, 144>}, {pipeline_mode = #tpu.pipeline_mode<synchronous>, transform_indices = @transform_5, window_bounds = array<i64: 16, 1>}, {pipeline_mode = #tpu.pipeline_mode<synchronous>, transform_indices = @transform_6, window_bounds = array<i64: 8, 16>}, {pipeline_mode = #tpu.pipeline_mode<synchronous>, transform_indices = @transform_7, window_bounds = array<i64: 8, 1>}, {transform_indices = @transform_8, window_bounds = array<i64: 1, 8, 256>}]} {
    %c0 = arith.constant 0 : index
    %c0_0 = arith.constant 0 : index
    %c0_1 = arith.constant 0 : index
    %0 = vector.load %arg2[%c0, %c0_0, %c0_1] : memref<1x8x256xf32, #tpu.memory_space<vmem>>, vector<1x8x256xf32>
    %1 = vector.shape_cast %0 : vector<1x8x256xf32> to vector<8x256xf32>
    %c0_2 = arith.constant 0 : index
    %c0_3 = arith.constant 0 : index
    %2 = vector.load %arg4[%c0_2, %c0_3] : memref<16x1xf32, #tpu.memory_space<vmem>>, vector<16x1xf32>
    %c0_4 = arith.constant 0 : index
    %c0_5 = arith.constant 0 : index
    %3 = vector.load %arg3[%c0_4, %c0_5] : memref<16x8xf32, #tpu.memory_space<vmem>>, vector<16x8xf32>
    %cst = arith.constant dense<0.000000e+00> : vector<16x256xf32>
    %4 = tpu.matmul %3, %1, %cst {dimension_numbers = #tpu.dot_dimension_numbers<[1], [0], [0], [1], [0, 0, 1, 1], [], []>} : vector<16x8xf32>, vector<8x256xf32>, vector<16x256xf32> -> vector<16x256xf32>
    %5 = vector.broadcast %2 : vector<16x1xf32> to vector<16x256xf32>
    %6 = arith.addf %4, %5 : vector<16x256xf32>
    %7 = vector.shape_cast %2 : vector<16x1xf32> to vector<16x1xf32>
    %8 = vector.broadcast %7 : vector<16x1xf32> to vector<16x256xf32>
    %c17_i32 = arith.constant 17 : i32
    %9 = tpu.dynamic_rotate %6 by %c17_i32 dim 1 : vector<16x256xf32>, i32 -> vector<16x256xf32>
    %c0_6 = arith.constant 0 : index
    %c0_7 = arith.constant 0 : index
    %10 = vector.load %arg1[%c0_6, %c0_7] : memref<8x256xi32, #tpu.memory_space<vmem>>, vector<1x256xi32>
    %c0_i32 = arith.constant 0 : i32
    %11 = vector.broadcast %c0_i32 : i32 to vector<1x256xi32>
    %12 = arith.cmpi ne, %10, %11 : vector<1x256xi32>
    %13 = vector.shape_cast %12 : vector<1x256xi1> to vector<1x256xi1>
    %14 = vector.broadcast %13 : vector<1x256xi1> to vector<16x256xi1>
    %15 = arith.select %14, %9, %8 : vector<16x256xi1>, vector<16x256xf32>
    %c0_8 = arith.constant 0 : index
    %c0_9 = arith.constant 0 : index
    %16 = vector.load %arg10[%c0_8, %c0_9] : memref<144x256xf32, #tpu.memory_space<vmem>>, vector<16x256xf32>
    tpu.vector_store %arg10[%c0_8, %c0_9], %15 {strides = array<i32>} : memref<144x256xf32, #tpu.memory_space<vmem>>, vector<16x256xf32>,
    %c16_i32 = arith.constant 16 : i32
    %17 = tpu.dynamic_rotate %6 by %c16_i32 dim 1 : vector<16x256xf32>, i32 -> vector<16x256xf32>
    %c1 = arith.constant 1 : index
    %c0_10 = arith.constant 0 : index
    %18 = vector.load %arg1[%c1, %c0_10] : memref<8x256xi32, #tpu.memory_space<vmem>>, vector<1x256xi32>
    %c0_i32_11 = arith.constant 0 : i32
    %19 = vector.broadcast %c0_i32_11 : i32 to vector<1x256xi32>
    %20 = arith.cmpi ne, %18, %19 : vector<1x256xi32>
    %21 = vector.shape_cast %20 : vector<1x256xi1> to vector<1x256xi1>
    %22 = vector.broadcast %21 : vector<1x256xi1> to vector<16x256xi1>
    %23 = arith.select %22, %17, %8 : vector<16x256xi1>, vector<16x256xf32>
    %c16 = arith.constant 16 : index
    %c0_12 = arith.constant 0 : index
    %24 = vector.load %arg10[%c16, %c0_12] : memref<144x256xf32, #tpu.memory_space<vmem>>, vector<16x256xf32>
    tpu.vector_store %arg10[%c16, %c0_12], %23 {strides = array<i32>} : memref<144x256xf32, #tpu.memory_space<vmem>>, vector<16x256xf32>,
    %c15_i32 = arith.constant 15 : i32
    %25 = tpu.dynamic_rotate %6 by %c15_i32 dim 1 : vector<16x256xf32>, i32 -> vector<16x256xf32>
    %c2 = arith.constant 2 : index
    %c0_13 = arith.constant 0 : index
    %26 = vector.load %arg1[%c2, %c0_13] : memref<8x256xi32, #tpu.memory_space<vmem>>, vector<1x256xi32>
    %c0_i32_14 = arith.constant 0 : i32
    %27 = vector.broadcast %c0_i32_14 : i32 to vector<1x256xi32>
    %28 = arith.cmpi ne, %26, %27 : vector<1x256xi32>
    %29 = vector.shape_cast %28 : vector<1x256xi1> to vector<1x256xi1>
    %30 = vector.broadcast %29 : vector<1x256xi1> to vector<16x256xi1>
    %31 = arith.select %30, %25, %8 : vector<16x256xi1>, vector<16x256xf32>
    %c32 = arith.constant 32 : index
    %c0_15 = arith.constant 0 : index
    %32 = vector.load %arg10[%c32, %c0_15] : memref<144x256xf32, #tpu.memory_space<vmem>>, vector<16x256xf32>
    tpu.vector_store %arg10[%c32, %c0_15], %31 {strides = array<i32>} : memref<144x256xf32, #tpu.memory_space<vmem>>, vector<16x256xf32>,
    %c1_i32 = arith.constant 1 : i32
    %33 = tpu.dynamic_rotate %6 by %c1_i32 dim 1 : vector<16x256xf32>, i32 -> vector<16x256xf32>
    %c3 = arith.constant 3 : index
    %c0_16 = arith.constant 0 : index
    %34 = vector.load %arg1[%c3, %c0_16] : memref<8x256xi32, #tpu.memory_space<vmem>>, vector<1x256xi32>
    %c0_i32_17 = arith.constant 0 : i32
    %35 = vector.broadcast %c0_i32_17 : i32 to vector<1x256xi32>
    %36 = arith.cmpi ne, %34, %35 : vector<1x256xi32>
    %37 = vector.shape_cast %36 : vector<1x256xi1> to vector<1x256xi1>
    %38 = vector.broadcast %37 : vector<1x256xi1> to vector<16x256xi1>
    %39 = arith.select %38, %33, %8 : vector<16x256xi1>, vector<16x256xf32>
    %c48 = arith.constant 48 : index
    %c0_18 = arith.constant 0 : index
    %40 = vector.load %arg10[%c48, %c0_18] : memref<144x256xf32, #tpu.memory_space<vmem>>, vector<16x256xf32>
    tpu.vector_store %arg10[%c48, %c0_18], %39 {strides = array<i32>} : memref<144x256xf32, #tpu.memory_space<vmem>>, vector<16x256xf32>,
    %c64 = arith.constant 64 : index
    %c0_19 = arith.constant 0 : index
    %41 = vector.load %arg10[%c64, %c0_19] : memref<144x256xf32, #tpu.memory_space<vmem>>, vector<16x256xf32>
    tpu.vector_store %arg10[%c64, %c0_19], %6 {strides = array<i32>} : memref<144x256xf32, #tpu.memory_space<vmem>>, vector<16x256xf32>,
    %c255_i32 = arith.constant 255 : i32
    %42 = tpu.dynamic_rotate %6 by %c255_i32 dim 1 : vector<16x256xf32>, i32 -> vector<16x256xf32>
    %c4 = arith.constant 4 : index
    %c0_20 = arith.constant 0 : index
    %43 = vector.load %arg1[%c4, %c0_20] : memref<8x256xi32, #tpu.memory_space<vmem>>, vector<1x256xi32>
    %c0_i32_21 = arith.constant 0 : i32
    %44 = vector.broadcast %c0_i32_21 : i32 to vector<1x256xi32>
    %45 = arith.cmpi ne, %43, %44 : vector<1x256xi32>
    %46 = vector.shape_cast %45 : vector<1x256xi1> to vector<1x256xi1>
    %47 = vector.broadcast %46 : vector<1x256xi1> to vector<16x256xi1>
    %48 = arith.select %47, %42, %8 : vector<16x256xi1>, vector<16x256xf32>
    %c80 = arith.constant 80 : index
    %c0_22 = arith.constant 0 : index
    %49 = vector.load %arg10[%c80, %c0_22] : memref<144x256xf32, #tpu.memory_space<vmem>>, vector<16x256xf32>
    tpu.vector_store %arg10[%c80, %c0_22], %48 {strides = array<i32>} : memref<144x256xf32, #tpu.memory_space<vmem>>, vector<16x256xf32>,
    %c241_i32 = arith.constant 241 : i32
    %50 = tpu.dynamic_rotate %6 by %c241_i32 dim 1 : vector<16x256xf32>, i32 -> vector<16x256xf32>
    %c5 = arith.constant 5 : index
    %c0_23 = arith.constant 0 : index
    %51 = vector.load %arg1[%c5, %c0_23] : memref<8x256xi32, #tpu.memory_space<vmem>>, vector<1x256xi32>
    %c0_i32_24 = arith.constant 0 : i32
    %52 = vector.broadcast %c0_i32_24 : i32 to vector<1x256xi32>
    %53 = arith.cmpi ne, %51, %52 : vector<1x256xi32>
    %54 = vector.shape_cast %53 : vector<1x256xi1> to vector<1x256xi1>
    %55 = vector.broadcast %54 : vector<1x256xi1> to vector<16x256xi1>
    %56 = arith.select %55, %50, %8 : vector<16x256xi1>, vector<16x256xf32>
    %c96 = arith.constant 96 : index
    %c0_25 = arith.constant 0 : index
    %57 = vector.load %arg10[%c96, %c0_25] : memref<144x256xf32, #tpu.memory_space<vmem>>, vector<16x256xf32>
    tpu.vector_store %arg10[%c96, %c0_25], %56 {strides = array<i32>} : memref<144x256xf32, #tpu.memory_space<vmem>>, vector<16x256xf32>,
    %c240_i32 = arith.constant 240 : i32
    %58 = tpu.dynamic_rotate %6 by %c240_i32 dim 1 : vector<16x256xf32>, i32 -> vector<16x256xf32>
    %c6 = arith.constant 6 : index
    %c0_26 = arith.constant 0 : index
    %59 = vector.load %arg1[%c6, %c0_26] : memref<8x256xi32, #tpu.memory_space<vmem>>, vector<1x256xi32>
    %c0_i32_27 = arith.constant 0 : i32
    %60 = vector.broadcast %c0_i32_27 : i32 to vector<1x256xi32>
    %61 = arith.cmpi ne, %59, %60 : vector<1x256xi32>
    %62 = vector.shape_cast %61 : vector<1x256xi1> to vector<1x256xi1>
    %63 = vector.broadcast %62 : vector<1x256xi1> to vector<16x256xi1>
    %64 = arith.select %63, %58, %8 : vector<16x256xi1>, vector<16x256xf32>
    %c112 = arith.constant 112 : index
    %c0_28 = arith.constant 0 : index
    %65 = vector.load %arg10[%c112, %c0_28] : memref<144x256xf32, #tpu.memory_space<vmem>>, vector<16x256xf32>
    tpu.vector_store %arg10[%c112, %c0_28], %64 {strides = array<i32>} : memref<144x256xf32, #tpu.memory_space<vmem>>, vector<16x256xf32>,
    %c239_i32 = arith.constant 239 : i32
    %66 = tpu.dynamic_rotate %6 by %c239_i32 dim 1 : vector<16x256xf32>, i32 -> vector<16x256xf32>
    %c7 = arith.constant 7 : index
    %c0_29 = arith.constant 0 : index
    %67 = vector.load %arg1[%c7, %c0_29] : memref<8x256xi32, #tpu.memory_space<vmem>>, vector<1x256xi32>
    %c0_i32_30 = arith.constant 0 : i32
    %68 = vector.broadcast %c0_i32_30 : i32 to vector<1x256xi32>
    %69 = arith.cmpi ne, %67, %68 : vector<1x256xi32>
    %70 = vector.shape_cast %69 : vector<1x256xi1> to vector<1x256xi1>
    %71 = vector.broadcast %70 : vector<1x256xi1> to vector<16x256xi1>
    %72 = arith.select %71, %66, %8 : vector<16x256xi1>, vector<16x256xf32>
    %c128 = arith.constant 128 : index
    %c0_31 = arith.constant 0 : index
    %73 = vector.load %arg10[%c128, %c0_31] : memref<144x256xf32, #tpu.memory_space<vmem>>, vector<16x256xf32>
    tpu.vector_store %arg10[%c128, %c0_31], %72 {strides = array<i32>} : memref<144x256xf32, #tpu.memory_space<vmem>>, vector<16x256xf32>,
    %c0_32 = arith.constant 0 : index
    %c0_33 = arith.constant 0 : index
    %74 = vector.load %arg5[%c0_32, %c0_33] : memref<16x144xf32, #tpu.memory_space<vmem>>, vector<16x144xf32>
    %c0_34 = arith.constant 0 : index
    %c0_35 = arith.constant 0 : index
    %75 = vector.load %arg10[%c0_34, %c0_35] : memref<144x256xf32, #tpu.memory_space<vmem>>, vector<144x256xf32>
    %cst_36 = arith.constant dense<0.000000e+00> : vector<16x256xf32>
    %76 = tpu.matmul %74, %75, %cst_36 {dimension_numbers = #tpu.dot_dimension_numbers<[1], [0], [0], [1], [0, 0, 1, 1], [], []>} : vector<16x144xf32>, vector<144x256xf32>, vector<16x256xf32> -> vector<16x256xf32>
    %c0_37 = arith.constant 0 : index
    %c0_38 = arith.constant 0 : index
    %77 = vector.load %arg6[%c0_37, %c0_38] : memref<16x1xf32, #tpu.memory_space<vmem>>, vector<16x1xf32>
    %78 = vector.broadcast %77 : vector<16x1xf32> to vector<16x256xf32>
    %79 = arith.addf %76, %78 : vector<16x256xf32>
    %80 = arith.addf %79, %6 : vector<16x256xf32>
    %c0_39 = arith.constant 0 : index
    %c0_40 = arith.constant 0 : index
    %81 = vector.load %arg7[%c0_39, %c0_40] : memref<8x16xf32, #tpu.memory_space<vmem>>, vector<8x16xf32>
    %cst_41 = arith.constant dense<0.000000e+00> : vector<8x256xf32>
    %82 = tpu.matmul %81, %80, %cst_41 {dimension_numbers = #tpu.dot_dimension_numbers<[1], [0], [0], [1], [0, 0, 1, 1], [], []>} : vector<8x16xf32>, vector<16x256xf32>, vector<8x256xf32> -> vector<8x256xf32>
    %c0_42 = arith.constant 0 : index
    %c0_43 = arith.constant 0 : index
    %83 = vector.load %arg8[%c0_42, %c0_43] : memref<8x1xf32, #tpu.memory_space<vmem>>, vector<8x1xf32>
    %84 = vector.broadcast %83 : vector<8x1xf32> to vector<8x256xf32>
    %85 = arith.addf %82, %84 : vector<8x256xf32>
    %86 = arith.addf %85, %1 : vector<8x256xf32>
    %c0_44 = arith.constant 0 : index
    %c0_45 = arith.constant 0 : index
    %c0_46 = arith.constant 0 : index
    %87 = vector.load %arg9[%c0_44, %c0_45, %c0_46] : memref<1x8x256xf32, #tpu.memory_space<vmem>>, vector<1x8x256xf32>
    %88 = vector.shape_cast %87 : vector<1x8x256xf32> to vector<8x256xf32>
    %89 = vector.shape_cast %86 : vector<8x256xf32> to vector<1x8x256xf32>
    tpu.vector_store %arg9[%c0_44, %c0_45, %c0_46], %89 {strides = array<i32>} : memref<1x8x256xf32, #tpu.memory_space<vmem>>, vector<1x8x256xf32>,
    return
  }
  func.func @transform_0(%arg0: i32) -> (i32, i32) {
    %c0_i32 = arith.constant 0 : i32
    %c0_i32_0 = arith.constant 0 : i32
    %c0_i32_1 = arith.constant 0 : i32
    return %c0_i32, %c0_i32_0 : i32, i32
  }
  func.func @transform_1(%arg0: i32) -> (i32, i32, i32) {
    %c0_i32 = arith.constant 0 : i32
    %c0_i32_0 = arith.constant 0 : i32
    %c0_i32_1 = arith.constant 0 : i32
    return %arg0, %c0_i32, %c0_i32_0 : i32, i32, i32
  }
  func.func @transform_2(%arg0: i32) -> (i32, i32) {
    %c0_i32 = arith.constant 0 : i32
    %c0_i32_0 = arith.constant 0 : i32
    %c0_i32_1 = arith.constant 0 : i32
    return %c0_i32, %c0_i32_0 : i32, i32
  }
  func.func @transform_3(%arg0: i32) -> (i32, i32) {
    %c0_i32 = arith.constant 0 : i32
    %c0_i32_0 = arith.constant 0 : i32
    %c0_i32_1 = arith.constant 0 : i32
    return %c0_i32, %c0_i32_0 : i32, i32
  }
  func.func @transform_4(%arg0: i32) -> (i32, i32) {
    %c0_i32 = arith.constant 0 : i32
    %c0_i32_0 = arith.constant 0 : i32
    %c0_i32_1 = arith.constant 0 : i32
    return %c0_i32, %c0_i32_0 : i32, i32
  }
  func.func @transform_5(%arg0: i32) -> (i32, i32) {
    %c0_i32 = arith.constant 0 : i32
    %c0_i32_0 = arith.constant 0 : i32
    %c0_i32_1 = arith.constant 0 : i32
    return %c0_i32, %c0_i32_0 : i32, i32
  }
  func.func @transform_6(%arg0: i32) -> (i32, i32) {
    %c0_i32 = arith.constant 0 : i32
    %c0_i32_0 = arith.constant 0 : i32
    %c0_i32_1 = arith.constant 0 : i32
    return %c0_i32, %c0_i32_0 : i32, i32
  }
  func.func @transform_7(%arg0: i32) -> (i32, i32) {
    %c0_i32 = arith.constant 0 : i32
    %c0_i32_0 = arith.constant 0 : i32
    %c0_i32_1 = arith.constant 0 : i32
    return %c0_i32, %c0_i32_0 : i32, i32
  }
  func.func @transform_8(%arg0: i32) -> (i32, i32, i32) {
    %c0_i32 = arith.constant 0 : i32
    %c0_i32_0 = arith.constant 0 : i32
    %c0_i32_1 = arith.constant 0 : i32
    return %arg0, %c0_i32, %c0_i32_0 : i32, i32, i32
  }
}

</mosaic_0001>

<bundles_post_ra>
// kernel: tpu_custom_call.1
= control target key start
LH: loop header
LB: loop body
LE: loop exit
PB: predicated region body
PF: predicated region fallthrough
CT: control target
= control target key end

     0   :  { %vm46_vm0 = vcmask 64512   ;;  %v823_v3 = vmov 0.0   ;;  %v824_v5 = vmov 0   ;;  %s1276_s0 = inlined_call_operand.vmem [shape: s32[8,256], index: 0, kind: input, shape index: {}]   ;;  %s1277_s1 = inlined_call_operand.vmem [shape: f32[1,8,256], index: 1, kind: input, shape index: {}]   ;;  %s1278_s2 = inlined_call_operand.vmem [shape: f32[16,8], index: 2, kind: input, shape index: {}]   ;;  %s1279_s3 = inlined_call_operand.vmem [shape: f32[16,1], index: 3, kind: input, shape index: {}]   ;;  %s1280_s4 = inlined_call_operand.vmem [shape: f32[16,144], index: 4, kind: input, shape index: {}]   ;;  %s1281_s5 = inlined_call_operand.vmem [shape: f32[16,1], index: 5, kind: input, shape index: {}]   ;;  %s1282_s6 = inlined_call_operand.vmem [shape: f32[8,16], index: 6, kind: input, shape index: {}]   ;;  %s1283_s7 = inlined_call_operand.vmem [shape: f32[8,1], index: 7, kind: input, shape index: {}]   ;;  %s1284_s8 = inlined_call_operand.hbm [shape: f32[1,8,256], index: 8, kind: output, shape index: {}]  }
   0x1   :  { %v882_v0 = vld [vmem:[%s1277_s1 + $0x8] sm:$0xff]  ;;  %v887_v1 = vld [vmem:[%s1277_s1] sm:$0xff]  ;;  %117 = vmatprep.mubr.f32.mxu0 %v823_v3  ;;  %717 = vset.pattern.permute.xlu0 %v824_v5 }
   0x2   :  { %v34_v2 = vld [vmem:[%s1278_s2] sm:$0xff]  ;;  %53 = vmatprep.subr.mxu0 %v882_v0 }
   0x3   :  { %v32_v4 = vld [vmem:[%s1279_s3] sm:$0xff]  ;;  %54 = vmatpush1.msra.mxu0 %v887_v1 }
   0x4   :  { %13 = vsyncpa [#allocation4], 0  ;;  %654 = vmatmul.mubr.msk.f32.vlgmr.msra.gmra.mrb[0].mxu0 %vm46_vm0, %v34_v2  ;;  %38 = vperm.xlu0 %717, %v32_v4   ;;  %v35_v6 = vld [vmem:[%s1278_s2 + $0x8] sm:$0xff]  ;;  %s825_s2 = smov 16   ;;  %s827_s16 = smov 15   ;;  %v455_v20 = vld [vmem:[%s1281_s5] sm:$0xff]  ;;  %v138_v24 = vlaneseq }
   0x5   :  { %123 = vmatprep.mubr.f32.mxu0 %v823_v3  ;;  %v33_v7 = vld [vmem:[%s1279_s3 + $0x8] sm:$0xff]  ;;  %798 = vset.pattern.permute.xlu1 %v824_v5  ;;  %s826_s3 = smov 17   ;;  %s828_s17 = smov 1   ;;  %v556_v21 = vld [vmem:[%s1283_s7] sm:$0xff]  ;;  %vm467_vm1 = vcmask 130048  }
   0x6   :  { %s829_s18 = smov 127   ;;  %s830_s19 = smov 113   ;;  %v416_v22 = vld [vmem:[%s1280_s4 + $0x8] sm:$0xff]  ;;  %v149_v26 = vshrl.u32 %v138_v24, 7  ;;  %v955_v33 = vand.u32 127, %v138_v24 }
   0x7   :  { %s831_s20 = smov 112   ;;  %s832_s21 = smov 111   ;;  %663 = vmatprep.mubr.msk.f32.mxu1 %vm467_vm1, %v416_v22  ;;  %v456_v23 = vld [vmem:[%s1281_s5 + $0x8] sm:$0xff] }
   0x8   :  { %655 = vmatmul.mubr.msk.f32.gmra.mrb[2].mxu0 %vm46_vm0, %v35_v6  ;;  %43 = vperm.xlu0 %717, %v33_v7   ;;  %v145_v25 = vld [vmem:[%s1276_s0] ss:$8 sm:$0x3]  ;;  %v656_v27 = vld [vmem:[%s1276_s0 + $0x1] ss:$8 sm:$0x3] }
   0x9   :  { %629 = vmatprep.mubr.f32.mxu0 %v823_v3  ;;  %vm146_vm2 = vcmp.ne.s32.totalorder %v145_v25, 0  ;;  %v657_v28 = vld [vmem:[%s1276_s0 + $0x2] ss:$8 sm:$0x3]  ;;  %v947_v29 = vsub.s32 1, %v149_v26  ;;  %v949_v30 = vsub.s32 0, %v149_v26 }
   0xa   :  { %vm181_vm3 = vcmp.ne.s32.totalorder %v656_v27, 0  ;;  %v147_v31 = vsel %vm146_vm2, 1, %v824_v5  ;;  %v658_v32 = vld [vmem:[%s1276_s0 + $0x3] ss:$8 sm:$0x3]  ;;  %vm216_vm4 = vcmp.ne.s32.totalorder %v657_v28, 0 }
   0xb   :  { %v182_v34 = vsel %vm181_vm3, 1, %v824_v5  ;;  %v659_v35 = vld [vmem:[%s1276_s0 + $0x4] ss:$8 sm:$0x3]  ;;  %v155_v36 = vrot.slane %v147_v31, %v947_v29  ;;  %v151_v37 = vrot.slane %v147_v31, %v949_v30  ;;  %vm251_vm5 = vcmp.ne.s32.totalorder %v658_v32, 0  ;;  %s833_s25 = smov [#allocation3]  }
   0xc   :  { %v217_v38 = vsel %vm216_vm4, 1, %v824_v5  ;;  %v190_v41 = vrot.slane %v182_v34, %v947_v29  ;;  %v186_v42 = vrot.slane %v182_v34, %v949_v30  ;;  %vm290_vm6 = vcmp.ne.s32.totalorder %v659_v35, 0  ;;  %v660_v43 = vld [vmem:[%s1276_s0 + $0x5] ss:$8 sm:$0x3]  ;;  %s646_s26 = sshll.u32 %s833_s25, 4  ;;  %s647_s26 = int_to_ptr.vmem [resolvable:$true] %s646_s26 }
   0xd   :  { %vm174_vm7 = vcmp.lt.s32.totalorder %v955_v33, 16  ;;  %vm140_vm8 = vcmp.lt.s32.totalorder %v955_v33, 17  ;;  %v252_v44 = vsel %vm251_vm5, 1, %v824_v5  ;;  %vm972_vm9 = vcmp.eq.s32.totalorder %v155_v36, 1  ;;  %s799_s27 = scalar_lea.vmem %s647_s26, 256  ;;  %p804_p1 = scmp.lt.s32.totalorder %s647_s26, %s647_s26 }
   0xe   :  { %vm976_vm10 = vcmp.eq.s32.totalorder %v151_v37, 1  ;;  %v225_v47 = vrot.slane %v217_v38, %v947_v29  ;;  %v221_v48 = vrot.slane %v217_v38, %v949_v30  ;;  %v987_v51 = vsel %vm290_vm6, 1, %v824_v5  ;;  %v661_v38 = vld [vmem:[%s1276_s0 + $0x6] ss:$8 sm:$0x3]  ;;  %p800_p0 = scmp.ne.s32.totalorder %s647_s26, %s799_s27  ;;  %p805_p2 = scmp.lt.s32.totalorder %s799_s27, %s799_s27 }
   0xf   :  { %vm325_vm11 = vcmp.ne.s32.totalorder %v660_v43, 0  ;;  %vm209_vm12 = vcmp.lt.s32.totalorder %v955_v33, 15  ;;  %vm992_vm13 = vcmp.eq.s32.totalorder %v190_v41, 1  ;;  %vm996_vm14 = vcmp.eq.s32.totalorder %v186_v42, 1 }
  0x10   :  { %v260_v56 = vrot.slane %v252_v44, %v947_v29  ;;  %v256_v57 = vrot.slane %v252_v44, %v949_v30  ;;  %vm1002_vm15 = vcmp.eq.s32.totalorder %v225_v47, 1  ;;  %vm1006_vm0 = vcmp.eq.s32.totalorder %v221_v48, 1  ;;  %p806_p3 = por %p805_p2, %p804_p1 }
  0x11   :  { %v299_v2 = vrot.slane %v987_v51, %v947_v29  ;;  %v1013_v3 = vsel %vm325_vm11, 1, %v824_v5  ;;  %vm244_vm2 = vcmp.lt.s32.totalorder %v955_v33, 1  ;;  %v295_v31 = vrot.slane %v987_v51, %v949_v30 }
  0x12   :  { %vm1038_vm3 = vcmp.eq.s32.totalorder %v260_v56, 1  ;;  %vm1042_vm4 = vcmp.eq.s32.totalorder %v256_v57, 1  ;;  %v334_v32 = vrot.slane %v1013_v3, %v947_v29  ;;  %vm283_vm5 = vcmp.lt.s32.totalorder %v955_v33, 127  ;;  %p807_p4 = pnand %p806_p3, %p800_p0 }
  0x13   :  { %vm1078_vm6 = vcmp.eq.s32.totalorder %v299_v2, 1  ;;  %v330_v56 = vrot.slane %v1013_v3, %v949_v30  ;;  %vm353_vm11 = vcmp.lt.s32.totalorder %v955_v33, 112 }
  0x83   :  { %v905_v8 = vpop.permute.xlu0 %38 }
  0x87   :  { %v907_v11 = vpop.permute.xlu0 %43 }
  0xd7   :  { %v119_v9 = vpop.f32.mrb[0].mxu0 }
  0xd8   :  { %v121_v10 = vpop.f32.mrb[1].mxu0  ;;  %v910_v13 = vadd.f32 %v119_v9, %v905_v8 }
  0xd9   :  { %v921_v18 = vadd.f32 %v121_v10, %v905_v8 }
  0xdb   :  { %v125_v12 = vpop.f32.mrb[2].mxu0 }
  0xdc   :  { %v913_v14 = vadd.f32 %v125_v12, %v907_v11  ;;  %v127_v15 = vpop.f32.mrb[3].mxu0 }
  0xdd   :  { %v916_v16 = vadd.f32 %v127_v15, %v907_v11 }
  0xde   :  { %v723_v17 = vpack.i.bf16 %v913_v14, %v910_v13  ;;  %v684_v50 = vpack.c.bf16 %v913_v14, %v910_v13 }
  0xdf   :  { %v738_v19 = vpack.i.bf16 %v916_v16, %v921_v18  ;;  %v682_v49 = vpack.c.bf16 %v916_v16, %v921_v18 }
  0xe0   :  { %724 = vrot.lane.b32.xlu0 %v723_v17, %s825_s2  ;;  %719 = vrot.lane.b32.xlu1 %v723_v17, %s826_s3 }
  0xe4   :  { %729 = vrot.lane.b32.xlu0 %v723_v17, %s827_s16  ;;  %739 = vrot.lane.b32.xlu1 %v738_v19, %s826_s3 }
  0xe8   :  { %734 = vrot.lane.b32.xlu0 %v723_v17, %s828_s17  ;;  %744 = vrot.lane.b32.xlu1 %v738_v19, %s825_s2 }
  0xec   :  { %759 = vrot.lane.b32.xlu0 %v723_v17, %s829_s18  ;;  %749 = vrot.lane.b32.xlu1 %v738_v19, %s827_s16 }
  0xf0   :  { %764 = vrot.lane.b32.xlu0 %v723_v17, %s830_s19  ;;  %754 = vrot.lane.b32.xlu1 %v738_v19, %s828_s17 }
  0xf4   :  { %769 = vrot.lane.b32.xlu0 %v723_v17, %s831_s20  ;;  %779 = vrot.lane.b32.xlu1 %v738_v19, %s829_s18 }
  0xf8   :  { %774 = vrot.lane.b32.xlu0 %v723_v17, %s832_s21  ;;  %784 = vrot.lane.b32.xlu1 %v738_v19, %s830_s19 }
  0xfc   :  { %459 = vperm.xlu0 %717, %v455_v20   ;;  %789 = vrot.lane.b32.xlu1 %v738_v19, %s831_s20 }
 0x100   :  { %559 = vperm.xlu0 %717, %v556_v21   ;;  %794 = vrot.lane.b32.xlu1 %v738_v19, %s832_s21 }
 0x104   :  { %464 = vperm.xlu1 %798, %v456_v23  }
 0x152   :  { %v725_v39 = vpop.permute.xlu0 %724  ;;  %v720_v40 = vpop.permute.xlu1 %719 }
 0x153   :  { %v722_v58 = vunpack.i.h.bf16 %v720_v40  ;;  %v721_v59 = vunpack.i.l.bf16 %v720_v40  ;;  %v727_v21 = vunpack.i.h.bf16 %v725_v39  ;;  %v726_v22 = vunpack.i.l.bf16 %v725_v39 }
 0x156   :  { %v989_v52 = vpop.permute.xlu0 %729  ;;  %v740_v53 = vpop.permute.xlu1 %739 }
 0x157   :  { %v742_v60 = vunpack.i.h.bf16 %v740_v53  ;;  %v741_v61 = vunpack.i.l.bf16 %v740_v53  ;;  %v732_v45 = vunpack.i.h.bf16 %v989_v52  ;;  %v731_v46 = vunpack.i.l.bf16 %v989_v52 }
 0x159   :  { %v141_v4 = vsel %vm140_vm8, %v721_v59, %v741_v61  ;;  %v142_v6 = vsel %vm140_vm8, %v722_v58, %v742_v60  ;;  %v143_v7 = vsel %vm140_vm8, %v741_v61, %v721_v59  ;;  %v144_v9 = vsel %vm140_vm8, %v742_v60, %v722_v58 }
 0x15a   :  { %v1023_v10 = vpop.permute.xlu0 %734  ;;  %v745_v12 = vpop.permute.xlu1 %744  ;;  %v159_v15 = vsel %vm972_vm9, %v141_v4, %v905_v8  ;;  %v161_v17 = vsel %vm972_vm9, %v142_v6, %v907_v11  ;;  %v158_v19 = vsel %vm976_vm10, %v143_v7, %v905_v8  ;;  %v160_v20 = vsel %vm976_vm10, %v144_v9, %v907_v11 }
 0x15b   :  { %v747_v23 = vunpack.i.h.bf16 %v745_v12  ;;  %v746_v24 = vunpack.i.l.bf16 %v745_v12  ;;  %v666_v27 = vpack.c.bf16 %v161_v17, %v159_v15  ;;  %v668_v28 = vpack.c.bf16 %v160_v20, %v158_v19 }
 0x15c   :  { %vm318_vm8 = vcmp.lt.s32.totalorder %v955_v33, 113  ;;  %vm1107_vm9 = vcmp.eq.s32.totalorder %v295_v31, 1  ;;  %v737_v7 = vunpack.i.h.bf16 %v1023_v10  ;;  %v736_v9 = vunpack.i.l.bf16 %v1023_v10 }
 0x15d   :  { %v176_v34 = vsel %vm174_vm7, %v727_v21, %v747_v23  ;;  %v178_v35 = vsel %vm174_vm7, %v747_v23, %v727_v21  ;;  %v175_v36 = vsel %vm174_vm7, %v726_v22, %v746_v24  ;;  %v177_v37 = vsel %vm174_vm7, %v746_v24, %v726_v22  ;;  %667 = vmatprep.subr.bf16.mxu1 %v666_v27 }
 0x15e   :  { %v1061_v39 = vpop.permute.xlu0 %759  ;;  %v750_v40 = vpop.permute.xlu1 %749  ;;  %v194_v41 = vsel %vm992_vm13, %v175_v36, %v905_v8  ;;  %v196_v42 = vsel %vm992_vm13, %v176_v34, %v907_v11  ;;  %v193_v43 = vsel %vm996_vm14, %v177_v37, %v905_v8  ;;  %v195_v44 = vsel %vm996_vm14, %v178_v35, %v907_v11  ;;  %669 = vmatpush1.bf16.msra.mxu1 %v668_v28 }
 0x15f   :  { %v752_v47 = vunpack.i.h.bf16 %v750_v40  ;;  %v751_v48 = vunpack.i.l.bf16 %v750_v40  ;;  %v670_v51 = vpack.c.bf16 %v196_v42, %v194_v41  ;;  %v672_v53 = vpack.c.bf16 %v195_v44, %v193_v43 }
 0x160   :  { %vm360_vm7 = vcmp.ne.s32.totalorder %v661_v38, 0  ;;  %vm1113_vm10 = vcmp.eq.s32.totalorder %v334_v32, 1  ;;  %v662_v32 = vld [vmem:[%s1276_s0 + $0x7] ss:$8 sm:$0x3]  ;;  %v762_v34 = vunpack.i.h.bf16 %v1061_v39  ;;  %v761_v35 = vunpack.i.l.bf16 %v1061_v39 }
 0x161   :  { %v211_v55 = vsel %vm209_vm12, %v732_v45, %v752_v47  ;;  %v213_v57 = vsel %vm209_vm12, %v752_v47, %v732_v45  ;;  %v210_v52 = vsel %vm209_vm12, %v731_v46, %v751_v48  ;;  %v212_v58 = vsel %vm209_vm12, %v751_v48, %v731_v46  ;;  %671 = vmatprep.subr.bf16.mxu1 %v670_v51 }
 0x162   :  { %v1092_v59 = vpop.permute.xlu0 %764  ;;  %v755_v60 = vpop.permute.xlu1 %754  ;;  %v229_v61 = vsel %vm1002_vm15, %v210_v52, %v905_v8  ;;  %v231_v2 = vsel %vm1002_vm15, %v211_v55, %v907_v11  ;;  %v228_v3 = vsel %vm1006_vm0, %v212_v58, %v905_v8  ;;  %v230_v4 = vsel %vm1006_vm0, %v213_v57, %v907_v11  ;;  %673 = vmatpush1.bf16.msra.mxu1 %v672_v53 }
 0x163   :  { %v757_v62 = vunpack.i.h.bf16 %v755_v60  ;;  %v756_v12 = vunpack.i.l.bf16 %v755_v60  ;;  %v674_v15 = vpack.c.bf16 %v231_v2, %v229_v61  ;;  %v676_v17 = vpack.c.bf16 %v230_v4, %v228_v3 }
 0x164   :  { %v361_v63 = vsel %vm360_vm7, 1, %v824_v5  ;;  %vm1151_vm12 = vcmp.eq.s32.totalorder %v330_v56, 1  ;;  %vm395_vm13 = vcmp.ne.s32.totalorder %v662_v32, 0  ;;  %v767_v39 = vunpack.i.h.bf16 %v1092_v59 }
 0x165   :  { %v246_v20 = vsel %vm244_vm2, %v737_v7, %v757_v62  ;;  %v248_v21 = vsel %vm244_vm2, %v757_v62, %v737_v7  ;;  %v245_v10 = vsel %vm244_vm2, %v736_v9, %v756_v12  ;;  %v247_v22 = vsel %vm244_vm2, %v756_v12, %v736_v9  ;;  %675 = vmatprep.subr.bf16.mxu1 %v674_v15 }
 0x166   :  { %v780_v23 = vpop.permute.xlu1 %779  ;;  %v264_v24 = vsel %vm1038_vm3, %v245_v10, %v905_v8  ;;  %v266_v27 = vsel %vm1038_vm3, %v246_v20, %v907_v11  ;;  %v263_v28 = vsel %vm1042_vm4, %v247_v22, %v905_v8  ;;  %v265_v31 = vsel %vm1042_vm4, %v248_v21, %v907_v11  ;;  %v770_v25 = vpop.permute.xlu0 %769  ;;  %677 = vmatpush1.bf16.msra.mxu1 %v676_v17 }
 0x167   :  { %v782_v36 = vunpack.i.h.bf16 %v780_v23  ;;  %v781_v37 = vunpack.i.l.bf16 %v780_v23  ;;  %v678_v38 = vpack.c.bf16 %v266_v27, %v264_v24  ;;  %v680_v40 = vpack.c.bf16 %v265_v31, %v263_v28 }
 0x168   :  { %v369_v41 = vrot.slane %v361_v63, %v947_v29  ;;  %v365_v26 = vrot.slane %v361_v63, %v949_v30  ;;  %v766_v45 = vunpack.i.l.bf16 %v1092_v59  ;;  %vm388_vm14 = vcmp.lt.s32.totalorder %v955_v33, 111  ;;  %v415_v33 = vld [vmem:[%s1280_s4] sm:$0xff] }
 0x169   :  { %v287_v42 = vsel %vm283_vm5, %v782_v36, %v762_v34  ;;  %v286_v43 = vsel %vm283_vm5, %v781_v37, %v761_v35  ;;  %v285_v46 = vsel %vm283_vm5, %v762_v34, %v782_v36  ;;  %v284_v47 = vsel %vm283_vm5, %v761_v35, %v781_v37  ;;  %679 = vmatprep.subr.bf16.mxu1 %v678_v38 }
 0x16a   :  { %v785_v48 = vpop.permute.xlu1 %784  ;;  %681 = vmatpush1.bf16.msra.mxu1 %v680_v40  ;;  %v303_v56 = vsel %vm1078_vm6, %v286_v43, %v905_v8  ;;  %v305_v55 = vsel %vm1078_vm6, %v287_v42, %v907_v11  ;;  %v772_v57 = vunpack.i.h.bf16 %v770_v25  ;;  %vm1171_vm15 = vcmp.eq.s32.totalorder %v369_v41, 1  ;;  %v775_v61 = vpop.permute.xlu0 %774 }
 0x16b   :  { %v787_v51 = vunpack.i.h.bf16 %v785_v48  ;;  %v786_v53 = vunpack.i.l.bf16 %v785_v48  ;;  %683 = vmatprep.subr.bf16.mxu1 %v682_v49  ;;  %vm1175_vm0 = vcmp.eq.s32.totalorder %v365_v26, 1  ;;  %v396_v59 = vsel %vm395_vm13, 1, %v824_v5  ;;  %v418_v48 = vld [vmem:[%s1280_s4 + $0x18] sm:$0xff] }
 0x16c   :  { %v771_v60 = vunpack.i.l.bf16 %v770_v25  ;;  %v302_v49 = vsel %vm1107_vm9, %v284_v47, %v905_v8  ;;  %v686_v5 = vpack.c.bf16 %v305_v55, %v303_v56  ;;  %v304_v9 = vsel %vm1107_vm9, %v285_v46, %v907_v11 }
 0x16d   :  { %v322_v54 = vsel %vm318_vm8, %v787_v51, %v767_v39  ;;  %v321_v2 = vsel %vm318_vm8, %v786_v53, %v766_v45  ;;  %v320_v3 = vsel %vm318_vm8, %v767_v39, %v787_v51  ;;  %v319_v4 = vsel %vm318_vm8, %v766_v45, %v786_v53 }
 0x16e   :  { %v790_v7 = vpop.permute.xlu1 %789  ;;  %685 = vmatpush1.bf16.msra.mxu1 %v684_v50  ;;  %v338_v15 = vsel %vm1113_vm10, %v321_v2, %v905_v8  ;;  %v340_v17 = vsel %vm1113_vm10, %v322_v54, %v907_v11  ;;  %v777_v63 = vunpack.i.h.bf16 %v775_v61  ;;  %v776_v20 = vunpack.i.l.bf16 %v775_v61 }
 0x16f   :  { %v792_v62 = vunpack.i.h.bf16 %v790_v7  ;;  %v791_v12 = vunpack.i.l.bf16 %v790_v7  ;;  %687 = vmatprep.subr.bf16.mxu1 %v686_v5  ;;  %v404_v6 = vrot.slane %v396_v59, %v947_v29  ;;  %v400_v21 = vrot.slane %v396_v59, %v949_v30  ;;  %v555_v7 = vld [vmem:[%s1282_s6] sm:$0xff] }
 0x170   :  { %v688_v22 = vpack.c.bf16 %v304_v9, %v302_v49  ;;  %v337_v23 = vsel %vm1151_vm12, %v319_v4, %v905_v8  ;;  %v690_v27 = vpack.c.bf16 %v340_v17, %v338_v15  ;;  %v339_v30 = vsel %vm1151_vm12, %v320_v3, %v907_v11 }
 0x171   :  { %v357_v10 = vsel %vm353_vm11, %v792_v62, %v772_v57  ;;  %v356_v50 = vsel %vm353_vm11, %v791_v12, %v771_v60  ;;  %v355_v19 = vsel %vm353_vm11, %v772_v57, %v792_v62  ;;  %v354_v24 = vsel %vm353_vm11, %v771_v60, %v791_v12 }
 0x172   :  { %v795_v29 = vpop.permute.xlu1 %794  ;;  %689 = vmatpush1.bf16.msra.mxu1 %v688_v22  ;;  %v373_v32 = vsel %vm1171_vm15, %v356_v50, %v905_v8  ;;  %v375_v34 = vsel %vm1171_vm15, %v357_v10, %v907_v11  ;;  %vm406_vm2 = vcmp.eq.s32.totalorder %v404_v6, 1  ;;  %v692_v36 = vpack.c.bf16 %v339_v30, %v337_v23 }
 0x173   :  { %v797_v28 = vunpack.i.h.bf16 %v795_v29  ;;  %v796_v31 = vunpack.i.l.bf16 %v795_v29  ;;  %691 = vmatprep.subr.bf16.mxu1 %v690_v27  ;;  %v694_v37 = vpack.c.bf16 %v375_v34, %v373_v32  ;;  %v372_v38 = vsel %vm1175_vm0, %v354_v24, %v905_v8 }
 0x174   :  { %v374_v40 = vsel %vm1175_vm0, %v355_v19, %v907_v11  ;;  %vm405_vm3 = vcmp.eq.s32.totalorder %v400_v21, 1 }
 0x175   :  { %v392_v35 = vsel %vm388_vm14, %v797_v28, %v777_v63  ;;  %v391_v25 = vsel %vm388_vm14, %v796_v31, %v776_v20  ;;  %v390_v41 = vsel %vm388_vm14, %v777_v63, %v797_v28  ;;  %v389_v26 = vsel %vm388_vm14, %v776_v20, %v796_v31 }
 0x176   :  { %693 = vmatpush1.bf16.msra.mxu1 %v692_v36  ;;  %v408_v42 = vsel %vm406_vm2, %v391_v25, %v905_v8  ;;  %v410_v43 = vsel %vm406_vm2, %v392_v35, %v907_v11  ;;  %v696_v44 = vpack.c.bf16 %v374_v40, %v372_v38  ;;  %v407_v45 = vsel %vm405_vm3, %v389_v26, %v905_v8  ;;  %v417_v8 = vld [vmem:[%s1280_s4 + $0x10] sm:$0xff] }
 0x177   :  { %695 = vmatprep.subr.bf16.mxu1 %v694_v37  ;;  %v698_v39 = vpack.c.bf16 %v410_v43, %v408_v42  ;;  %v409_v46 = vsel %vm405_vm3, %v390_v41, %v907_v11 }
 0x178   :  { %v700_v47 = vpack.c.bf16 %v409_v46, %v407_v45 }
 0x17a   :  { %697 = vmatpush1.bf16.msra.mxu1 %v696_v44 }
 0x17b   :  { %699 = vmatprep.subr.bf16.mxu1 %v698_v39  ;;  %v460_v53 = vpop.permute.xlu0 %459 }
 0x17e   :  { %701 = vmatpush1.bf16.msra.mxu1 %v700_v47 }
 0x17f   :  { %v560_v5 = vpop.permute.xlu0 %559 }
 0x181   :  { %539 = vmatmul.mubr.f32.vlgmr.msra.gmra.mrb[0].mxu1 %v415_v33 }
 0x182   :  { %664 = vmatprep.mubr.msk.f32.mxu1 %vm467_vm1, %v418_v48 }
 0x183   :  { %v465_v56 = vpop.permute.xlu1 %464 }
 0x185   :  { %545 = vmatmul.mubr.f32.gmra.mrb[2].mxu1 %v417_v8 }
 0x254   :  { %v540_v11 = vpop.f32.mrb[0].mxu1 }
 0x255   :  { %v542_v51 = vpop.f32.mrb[1].mxu1  ;;  %v541_v55 = vadd.f32 %v540_v11, %v460_v53 }
 0x256   :  { %v543_v57 = vadd.f32 %v542_v51, %v460_v53 }
 0x257   :  { %v551_v61 = vadd.f32 %v541_v55, %v910_v13 }
 0x258   :  { %v546_v52 = vpop.f32.mrb[2].mxu1  ;;  %v552_v2 = vadd.f32 %v543_v57, %v921_v18 }
 0x259   :  { %v547_v58 = vadd.f32 %v546_v52, %v465_v56  ;;  %v548_v59 = vpop.f32.mrb[3].mxu1 }
 0x25a   :  { %v549_v60 = vadd.f32 %v548_v59, %v465_v56 }
 0x25b   :  { %v553_v54 = vadd.f32 %v547_v58, %v913_v14 }
 0x25c   :  { %v554_v49 = vadd.f32 %v549_v60, %v916_v16 }
 0x25d   :  { %v704_v3 = vpack.c.bf16 %v553_v54, %v551_v61 }
 0x25e   :  { %v702_v4 = vpack.c.bf16 %v554_v49, %v552_v2 }
 0x260   :  { %703 = vmatprep.subr.bf16.mxu0 %v702_v4 }
 0x261   :  { %705 = vmatpush1.bf16.msra.mxu0 %v704_v3 }
 0x264   :  { %665 = vmatmul.mubr.msk.f32.vlgmr.msra.gmra.mrb[4].mxu0 %vm467_vm1, %v555_v7 }
 0x337   :  { %v631_v9 = vpop.f32.mrb[4].mxu0 }
 0x338   :  { %v632_v62 = vadd.f32 %v631_v9, %v560_v5  ;;  %v633_v13 = vpop.f32.mrb[5].mxu0 }
 0x339   :  { %v634_v14 = vadd.f32 %v633_v13, %v560_v5 }
 0x33a   :  { %v636_v18 = vadd.f32 %v632_v62, %v887_v1 }
 0x33b   :  { %v637_v16 = vadd.f32 %v634_v14, %v882_v0 }
 0x33c   :  { %638 = vst [vmem:[#allocation3] sm:$0xff] %v636_v18 }
 0x33d   :  { %639 = vst [vmem:[#allocation3 + $0x8] sm:$0xff] %v637_v16 }
 0x33e   :  { %810 = shalt.err (!%p807_p4)
}
 0x33f   :  { %s811_s29 = scalar_lea.hbm %s1284_s8, 256 }
 0x340   :  { %p812_p5 = scmp.ne.s32.totalorder %s1284_s8, %s811_s29  ;;  %p815_p6 = scmp.lt.u32.totalorder %s811_s29, %s1284_s8 }
 0x342   :  { %p817_p7 = pnand %p815_p6, %p812_p5 }
 0x344   :  { %820 = shalt.err (!%p817_p7)
}
 0x345   :  { %649 = dma.vmem_to_hbm [thread:$0]  %s647_s26, 256, %s1284_s8, [#allocation4]  }
 0x346   :  { %821 = dma.done.wait [#allocation4], 256  }
 0x347   :  { %822 = vsyncadd [#allocation4], 4294967040 }
 0x348   :  { %653 = vsyncpa [#allocation4], 1 }

</bundles_post_ra>
